<compile_context>
chip_gen: v5e
topology: v5e:2x2
jax: 0.10.0
libtpu: 0.0.40
codegen_flags: <defaults>
</compile_context>

<pallas_src>
import functools

import jax
import jax.numpy as jnp
from jax.experimental import pallas as pl
from jax.experimental.pallas import tpu as pltpu


def gated_attention_kernel(h_ref, uv_ref, w_ref, c_ref, out_ref, *,
                           n_valid, attn_dim):
    """One batch tile of the gated-attention MIL head.

    h_ref   : (tb, Np, D)  crop hidden vectors (Np = N padded to a multiple of 8)
    uv_ref  : (D, 2A)      [mil_attn_U.weight.T | mil_attn_V.weight.T] fused
    w_ref   : (1, A)       mil_attn_w weight (native nn.Linear layout, lane-dense)
    c_ref   : (C, D)       classifier_linear weight (native layout, lane-dense)
    out_ref : (tb, WOUT)   lane-dense packed output [ z | attn | y | zero-pad ]
    """
    tb, n_pad, d = h_ref.shape
    a = attn_dim
    c_out = c_ref.shape[0]
    wout = out_ref.shape[1]

    h = h_ref[...]                                   # (tb, n_pad, d) f32 or bf16
    # n_pad is a multiple of 8, so merging the leading dims is a free
    # (layout-preserving) reshape — no per-step relayout copy.
    h2 = h.reshape(tb * n_pad, d)

    # Fused gated-attention projection: one 2A-wide MXU matmul over the whole
    # flattened batch tile (U and V handled in a single MXU pass).
    huv = jnp.dot(h2, uv_ref[...], preferred_element_type=jnp.float32)  # (tb*Np, 2a)
    hu = huv[:, :a]                                  # 128-aligned lane slices
    hv = huv[:, a:]
    proj = jax.nn.sigmoid(hu) * jnp.tanh(hv)         # (tb*Np, a)  VPU + EUP, f32

    # Attention score: width-1 contraction on the VPU (multiply) + XLU lane
    # reduce instead of a 1-lane-wide MXU matmul.
    scored = proj * w_ref[...]                       # (tb*Np, a), sublane-broadcast of w
    score = jnp.sum(scored.reshape(tb, n_pad, a), axis=-1)   # (tb, Np), lane-dense

    # Mask padded crops so they get zero attention weight.
    if n_valid < n_pad:
        lane = jax.lax.broadcasted_iota(jnp.int32, (tb, n_pad), 1)
        score = jnp.where(lane < n_valid, score, jnp.float32(-1e30))

    # Numerically stable softmax over the crop (lane) axis.
    m = jnp.max(score, axis=-1, keepdims=True)       # (tb, 1)
    e = jnp.exp(score - m)                           # (tb, Np)
    denom = jnp.sum(e, axis=-1, keepdims=True)       # (tb, 1)
    inv = pl.reciprocal(denom, approx=True)          # EUP slot
    inv = inv * (2.0 - denom * inv)                  # one Newton step -> f32 accuracy
    attn = e * inv                                   # (tb, Np)

    # Attention-weighted average on the VPU/XLU: broadcast-multiply over lanes,
    # sublane reduce over the crop axis.  (Padded crops contribute 0.)
    attn3 = attn[:, :, None]                         # (tb, Np, 1), tiny relayout
    z = jnp.sum(attn3 * h, axis=1)                   # (tb, d) f32

    # Classifier head: for small out_class (==1) stay on the VPU; otherwise a
    # normal MXU matmul against the (C, D) weight (contract over D).
    if c_out == 1:
        logits = jnp.sum(z * c_ref[...], axis=-1, keepdims=True)        # (tb, 1)
    else:
        logits = jax.lax.dot_general(
            z, c_ref[...], (((1,), (1,)), ((), ())),
            preferred_element_type=jnp.float32)                          # (tb, C)
    y = jax.nn.sigmoid(logits)

    # Single lane-dense packed store: [ z | attn | y | zero pad ].
    pad = wout - (d + n_pad + c_out)
    pieces = [z, attn, y]
    if pad > 0:
        pieces.append(jnp.zeros((tb, pad), jnp.float32))
    out_ref[...] = jnp.concatenate(pieces, axis=-1)


def _pick_batch_tile(batch, n_pad, d, a, wout, h_itemsize,
                     vmem_budget_bytes=24 * 1024 * 1024):
    """Largest batch tile such that (a) the double-buffered h block, the
    (tb*Np, 2A) f32 matmul intermediates, and the double-buffered packed output
    block all fit a VMEM budget that is safe under the 32 MiB scoped limit we
    request (v7x has only 64 MiB physical VMEM), (b) the tile is a multiple of 8
    (or the full batch) to satisfy the (8,128) rule on the 2-D output block, and
    (c) the grid has at least 2 steps when B >= 16 so the "parallel" batch axis
    can shard across both TensorCores on v7x."""
    f32 = 4
    per_row = (
        2 * n_pad * d * h_itemsize            # double-buffered h input block
        + 3 * n_pad * (2 * a) * f32           # huv + live elementwise temps (proj/scored)
        + 2 * wout * f32                      # double-buffered packed output block
        + (d + 4 * n_pad) * f32               # z + score/attn-sized temps
    )
    max_rows = max(8, vmem_budget_bytes // per_row)
    tb = min(batch, max_rows)
    if batch >= 16:
        # Keep >= 2 grid steps for dual-TensorCore sharding on v7x.
        tb = min(tb, max(8, (batch // 2) // 8 * 8))
    if tb < batch:
        tb = max(8, (tb // 8) * 8)
    return tb


def attention_module_forward(h_crops, w_u, w_v, w_w, w_c, *,
                             batch_tile=None, use_bf16_matmul=False):
    """Pallas wrapper for AttentionModule.forward.

    h_crops: (B, N, D) float32 (or bfloat16).
    w_u, w_v: (D, A); w_w: (A, 1); w_c: (D, C) — pre-transposed nn.Linear
    weights (i.e. weight.T), all bias-free.
    Returns (z_weighted_avg (B, D), attn (B, N), y_crops (B, C)).
    """
    B, N, D = h_crops.shape
    A = w_u.shape[1]
    C = w_c.shape[1]

    # Fuse the two projection weights; lane-dense layouts for the narrow ones.
    w_uv = jnp.concatenate([w_u, w_v], axis=1)          # (D, 2A)
    w_row = w_w.reshape(1, A).astype(jnp.float32)       # (A, 1) -> (1, A)
    c_rows = w_c.T.astype(jnp.float32)                  # (D, C) -> (C, D)

    h_in = h_crops
    if use_bf16_matmul:
        h_in = h_in.astype(jnp.bfloat16)                # halves dominant HBM read
        w_uv = w_uv.astype(jnp.bfloat16)

    # Pad the crop axis to a multiple of 8 so the in-kernel (tb,Np,D)->(tb*Np,D)
    # merge is a free reshape (GMIC's default N=6 hits this path); padded crops
    # are masked out of the softmax inside the kernel.
    n_pad = ((N + 7) // 8) * 8
    if n_pad != N:
        h_in = jnp.pad(h_in, ((0, 0), (0, n_pad - N), (0, 0)))

    # One lane-dense packed output slab per batch row: [ z | attn | y | pad ].
    WOUT = ((D + n_pad + C + 127) // 128) * 128

    h_itemsize = jnp.dtype(h_in.dtype).itemsize
    tb = batch_tile if batch_tile is not None else _pick_batch_tile(
        B, n_pad, D, A, WOUT, h_itemsize)
    grid = (pl.cdiv(B, tb),)

    kernel = functools.partial(gated_attention_kernel, n_valid=N, attn_dim=A)

    packed = pl.pallas_call(
        kernel,
        grid=grid,
        in_specs=[
            pl.BlockSpec((tb, n_pad, D), lambda b: (b, 0, 0)),   # h tile
            pl.BlockSpec((D, 2 * A), lambda b: (0, 0)),          # fused U|V (whole)
            pl.BlockSpec((1, A), lambda b: (0, 0)),              # w (whole)
            pl.BlockSpec((C, D), lambda b: (0, 0)),              # classifier (whole)
        ],
        out_specs=pl.BlockSpec((tb, WOUT), lambda b: (b, 0)),    # packed slab
        out_shape=jax.ShapeDtypeStruct((B, WOUT), jnp.float32),
        compiler_params=pltpu.CompilerParams(
            dimension_semantics=("parallel",),                    # dual-TC on v7x
            vmem_limit_bytes=32 * 1024 * 1024),                   # matches budget
    )(h_in, w_uv, w_row, c_rows)

    z = packed[:, :D]
    attn = packed[:, D:D + N]
    y = packed[:, D + n_pad:D + n_pad + C]
    return z, attn, y


def attention_module_reference(h_crops, w_u, w_v, w_w, w_c):
    """Pure-JAX f32 reference mirroring the PyTorch forward."""
    B, N, D = h_crops.shape
    hf = h_crops.reshape(B * N, D)
    proj = jax.nn.sigmoid(hf @ w_u) * jnp.tanh(hf @ w_v)
    score = (proj @ w_w).reshape(B, N)
    attn = jax.nn.softmax(score, axis=1)
    z = jnp.sum(attn[:, :, None] * h_crops, axis=1)
    y = jax.nn.sigmoid(z @ w_c)
    return z, attn, y


if __name__ == "__main__":
    def _linear_wt(key, fan_in, fan_out):
        # PyTorch-Linear-like init, stored pre-transposed as (in, out).
        bound = 1.0 / jnp.sqrt(jnp.float32(fan_in))
        return jax.random.uniform(key, (fan_in, fan_out), jnp.float32,
                                  minval=-bound, maxval=bound)

    def _run_case(B, N, D, A, C, batch_tile=None, use_bf16_matmul=False,
                  atol=1e-5, rtol=1e-5):
        key = jax.random.PRNGKey(0)
        k_h, k_u, k_v, k_w, k_c = jax.random.split(key, 5)
        h_crops = jax.random.normal(k_h, (B, N, D), dtype=jnp.float32)
        w_u = _linear_wt(k_u, D, A)      # mil_attn_U.weight.T
        w_v = _linear_wt(k_v, D, A)      # mil_attn_V.weight.T
        w_w = _linear_wt(k_w, A, 1)      # mil_attn_w.weight.T
        w_c = _linear_wt(k_c, D, C)      # classifier_linear.weight.T

        z, attn, y = attention_module_forward(
            h_crops, w_u, w_v, w_w, w_c,
            batch_tile=batch_tile, use_bf16_matmul=use_bf16_matmul)
        jax.block_until_ready((z, attn, y))

        z_r, attn_r, y_r = attention_module_reference(h_crops, w_u, w_v, w_w, w_c)
        assert z.shape == (B, D) and attn.shape == (B, N) and y.shape == (B, C)
        assert jnp.allclose(z, z_r, atol=atol, rtol=rtol), \
            float(jnp.max(jnp.abs(z - z_r)))
        assert jnp.allclose(attn, attn_r, atol=atol, rtol=rtol), \
            float(jnp.max(jnp.abs(attn - attn_r)))
        assert jnp.allclose(y, y_r, atol=atol, rtol=rtol), \
            float(jnp.max(jnp.abs(y - y_r)))

    # Small shapes consistent with the module (in_dim=D, attn_dim=128, out_class=C).
    _run_case(B=2, N=8, D=32, A=128, C=1)                    # single grid step (tb == B)
    _run_case(B=16, N=8, D=32, A=128, C=1)                   # auto picker -> 2-step grid
    _run_case(B=16, N=8, D=32, A=128, C=1, batch_tile=8)     # explicit 2-step grid
    _run_case(B=8, N=6, D=32, A=128, C=1)                    # GMIC default 6 crops (pad+mask)
    _run_case(B=16, N=6, D=32, A=128, C=2,                   # bf16 MXU path + C>1 classifier
              use_bf16_matmul=True, atol=1e-1, rtol=1e-1)
    print("KERNEL_OK")
</pallas_src>

<mosaic_0001>
module attributes {stable_mosaic.version = 11 : i64} {
  func.func @gated_attention_kernel(%arg0: i32, %arg1: memref<2x8x32xf32, #tpu.memory_space<vmem>>, %arg2: memref<32x256xf32, #tpu.memory_space<vmem>>, %arg3: memref<1x128xf32, #tpu.memory_space<vmem>>, %arg4: memref<1x32xf32, #tpu.memory_space<vmem>>, %arg5: memref<2x128xf32, #tpu.memory_space<vmem>>) attributes {dimension_semantics = [#tpu.dimension_semantics<parallel>], iteration_bounds = array<i64: 1>, scalar_prefetch = 0 : i64, scratch_operands = 0 : i64, tpu.core_type = #tpu.core_type<tc>, window_params = [{transform_indices = @transform_0, window_bounds = array<i64: 2, 8, 32>}, {pipeline_mode = #tpu.pipeline_mode<synchronous>, transform_indices = @transform_1, window_bounds = array<i64: 32, 256>}, {pipeline_mode = #tpu.pipeline_mode<synchronous>, transform_indices = @transform_2, window_bounds = array<i64: 1, 128>}, {pipeline_mode = #tpu.pipeline_mode<synchronous>, transform_indices = @transform_3, window_bounds = array<i64: 1, 32>}, {transform_indices = @transform_4, window_bounds = array<i64: 2, 128>}]} {
    %c0 = arith.constant 0 : index
    %c0_0 = arith.constant 0 : index
    %c0_1 = arith.constant 0 : index
    %0 = vector.load %arg1[%c0, %c0_0, %c0_1] : memref<2x8x32xf32, #tpu.memory_space<vmem>>, vector<2x8x32xf32>
    %1 = vector.shape_cast %0 : vector<2x8x32xf32> to vector<16x32xf32>
    %c0_2 = arith.constant 0 : index
    %c0_3 = arith.constant 0 : index
    %2 = vector.load %arg2[%c0_2, %c0_3] : memref<32x256xf32, #tpu.memory_space<vmem>>, vector<32x256xf32>
    %cst = arith.constant dense<0.000000e+00> : vector<16x256xf32>
    %3 = tpu.matmul %1, %2, %cst {dimension_numbers = #tpu.dot_dimension_numbers<[1], [0], [0], [1], [0, 0, 1, 1], [], []>} : vector<16x32xf32>, vector<32x256xf32>, vector<16x256xf32> -> vector<16x256xf32>
    %4 = vector.extract_strided_slice %3 {offsets = [0, 0], sizes = [16, 128], strides = [1, 1]} : vector<16x256xf32> to vector<16x128xf32>
    %5 = vector.extract_strided_slice %3 {offsets = [0, 128], sizes = [16, 128], strides = [1, 1]} : vector<16x256xf32> to vector<16x128xf32>
    %6 = arith.negf %4 : vector<16x128xf32>
    %7 = math.exp %6 : vector<16x128xf32>
    %cst_4 = arith.constant 1.000000e+00 : f32
    %8 = vector.broadcast %cst_4 : f32 to vector<16x128xf32>
    %9 = arith.addf %8, %7 : vector<16x128xf32>
    %10 = arith.divf %8, %9 : vector<16x128xf32>
    %11 = math.tanh %5 : vector<16x128xf32>
    %12 = arith.mulf %10, %11 : vector<16x128xf32>
    %c0_5 = arith.constant 0 : index
    %c0_6 = arith.constant 0 : index
    %13 = vector.load %arg3[%c0_5, %c0_6] : memref<1x128xf32, #tpu.memory_space<vmem>>, vector<1x128xf32>
    %14 = vector.broadcast %13 : vector<1x128xf32> to vector<16x128xf32>
    %15 = arith.mulf %12, %14 : vector<16x128xf32>
    %16 = vector.shape_cast %15 : vector<16x128xf32> to vector<2x8x128xf32>
    %cst_7 = arith.constant dense<0.000000e+00> : vector<2x8xf32>
    %17 = vector.multi_reduction <add>, %16, %cst_7 [2] : vector<2x8x128xf32> to vector<2x8xf32>
    %cst_8 = arith.constant dense<0xFF800000> : vector<2xf32>
    %18 = vector.multi_reduction <maximumf>, %17, %cst_8 [1] : vector<2x8xf32> to vector<2xf32>
    %19 = vector.shape_cast %18 : vector<2xf32> to vector<2x1xf32>
    %20 = vector.broadcast %19 : vector<2x1xf32> to vector<2x8xf32>
    %21 = arith.subf %17, %20 : vector<2x8xf32>
    %22 = math.exp %21 : vector<2x8xf32>
    %cst_9 = arith.constant dense<0.000000e+00> : vector<2xf32>
    %23 = vector.multi_reduction <add>, %22, %cst_9 [1] : vector<2x8xf32> to vector<2xf32>
    %24 = vector.shape_cast %23 : vector<2xf32> to vector<2x1xf32>
    %25 = tpu.reciprocal %24 {approx = true} : vector<2x1xf32> -> vector<2x1xf32>
    %26 = arith.mulf %24, %25 : vector<2x1xf32>
    %cst_10 = arith.constant 2.000000e+00 : f32
    %27 = vector.broadcast %cst_10 : f32 to vector<2x1xf32>
    %28 = arith.subf %27, %26 : vector<2x1xf32>
    %29 = arith.mulf %25, %28 : vector<2x1xf32>
    %30 = vector.broadcast %29 : vector<2x1xf32> to vector<2x8xf32>
    %31 = arith.mulf %22, %30 : vector<2x8xf32>
    %32 = vector.shape_cast %31 : vector<2x8xf32> to vector<2x8x1xf32>
    %33 = vector.broadcast %32 : vector<2x8x1xf32> to vector<2x8x32xf32>
    %34 = arith.mulf %33, %0 : vector<2x8x32xf32>
    %cst_11 = arith.constant dense<0.000000e+00> : vector<2x32xf32>
    %35 = vector.multi_reduction <add>, %34, %cst_11 [1] : vector<2x8x32xf32> to vector<2x32xf32>
    %c0_12 = arith.constant 0 : index
    %c0_13 = arith.constant 0 : index
    %36 = vector.load %arg4[%c0_12, %c0_13] : memref<1x32xf32, #tpu.memory_space<vmem>>, vector<1x32xf32>
    %37 = vector.broadcast %36 : vector<1x32xf32> to vector<2x32xf32>
    %38 = arith.mulf %35, %37 : vector<2x32xf32>
    %cst_14 = arith.constant dense<0.000000e+00> : vector<2xf32>
    %39 = vector.multi_reduction <add>, %38, %cst_14 [1] : vector<2x32xf32> to vector<2xf32>
    %40 = vector.shape_cast %39 : vector<2xf32> to vector<2x1xf32>
    %41 = arith.negf %40 : vector<2x1xf32>
    %42 = math.exp %41 : vector<2x1xf32>
    %cst_15 = arith.constant 1.000000e+00 : f32
    %43 = vector.broadcast %cst_15 : f32 to vector<2x1xf32>
    %44 = arith.addf %43, %42 : vector<2x1xf32>
    %45 = arith.divf %43, %44 : vector<2x1xf32>
    %cst_16 = arith.constant 0.000000e+00 : f32
    %46 = vector.broadcast %cst_16 : f32 to vector<2x87xf32>
    %47 = tpu.concatenate %35, %31, %45, %46 in 1 : vector<2x32xf32>, vector<2x8xf32>, vector<2x1xf32>, vector<2x87xf32> -> vector<2x128xf32>
    %c0_17 = arith.constant 0 : index
    %c0_18 = arith.constant 0 : index
    %48 = vector.load %arg5[%c0_17, %c0_18] : memref<2x128xf32, #tpu.memory_space<vmem>>, vector<2x128xf32>
    tpu.vector_store %arg5[%c0_17, %c0_18], %47 {strides = array<i32>} : memref<2x128xf32, #tpu.memory_space<vmem>>, vector<2x128xf32>,
    return
  }
  func.func @transform_0(%arg0: i32) -> (i32, i32, i32) {
    %c0_i32 = arith.constant 0 : i32
    %c0_i32_0 = arith.constant 0 : i32
    %c0_i32_1 = arith.constant 0 : i32
    return %arg0, %c0_i32, %c0_i32_0 : i32, i32, i32
  }
  func.func @transform_1(%arg0: i32) -> (i32, i32) {
    %c0_i32 = arith.constant 0 : i32
    %c0_i32_0 = arith.constant 0 : i32
    %c0_i32_1 = arith.constant 0 : i32
    return %c0_i32, %c0_i32_0 : i32, i32
  }
  func.func @transform_2(%arg0: i32) -> (i32, i32) {
    %c0_i32 = arith.constant 0 : i32
    %c0_i32_0 = arith.constant 0 : i32
    %c0_i32_1 = arith.constant 0 : i32
    return %c0_i32, %c0_i32_0 : i32, i32
  }
  func.func @transform_3(%arg0: i32) -> (i32, i32) {
    %c0_i32 = arith.constant 0 : i32
    %c0_i32_0 = arith.constant 0 : i32
    %c0_i32_1 = arith.constant 0 : i32
    return %c0_i32, %c0_i32_0 : i32, i32
  }
  func.func @transform_4(%arg0: i32) -> (i32, i32) {
    %c0_i32 = arith.constant 0 : i32
    %c0_i32_0 = arith.constant 0 : i32
    return %arg0, %c0_i32 : i32, i32
  }
}

</mosaic_0001>

<bundles_post_ra>
// kernel: tpu_custom_call.1
= control target key start
LH: loop header
LB: loop body
LE: loop exit
PB: predicated region body
PF: predicated region fallthrough
CT: control target
= control target key end

     0   :  { %9 = vsyncpa [#allocation3], 0  ;;  %s508_s0 = inlined_call_operand.hbm [shape: f32[2,8,32], index: 0, kind: input, shape index: {}]   ;;  %s509_s1 = inlined_call_operand.hbm [shape: f32[32,256], index: 1, kind: input, shape index: {}]   ;;  %s510_s2 = inlined_call_operand.vmem [shape: f32[1,128], index: 2, kind: input, shape index: {}]   ;;  %s511_s3 = inlined_call_operand.vmem [shape: f32[1,32], index: 3, kind: input, shape index: {}]   ;;  %s512_s4 = inlined_call_operand.hbm [shape: f32[2,128], index: 4, kind: output, shape index: {}]  }
   0x1   :  { %10 = vsyncpa [#allocation6], 0 }
   0x2   :  { %11 = vsyncpa [#allocation4], 0  ;;  %s16_s17 = sshll.u32 %s508_s0, 4  ;;  %s436_s18 = smov [#allocation2]   ;;  %s17_s17 = int_to_ptr.hbm [resolvable:$true] %s16_s17 }
   0x3   :  { %s18_s19 = sshll.u32 %s436_s18, 4  ;;  %s29_s22 = sshll.u32 %s509_s1, 4  ;;  %s19_s19 = int_to_ptr.vmem [resolvable:$true] %s18_s19  ;;  %s30_s22 = int_to_ptr.hbm [resolvable:$true] %s29_s22 }
   0x4   :  { %s437_s23 = smov 128   ;;  %s438_s24 = smov 8  }
   0x5   :  { %24 = dma.hbm_to_vmem [thread:$0]  %s17_s17, 256, %s19_s19, [#allocation3], %s437_s23, %s437_s23, %s438_s24  }
   0x6   :  { %s439_s25 = smov [#allocation5]   ;;  %s440_s27 = smov 256  }
   0x7   :  { %s31_s26 = sshll.u32 %s439_s25, 4  ;;  %s441_s28 = smov 16   ;;  %s32_s26 = int_to_ptr.vmem [resolvable:$true] %s31_s26 }
   0x8   :  { %37 = dma.hbm_to_vmem [thread:$0]  %s30_s22, 1024, %s32_s26, [#allocation6], %s440_s27, %s440_s27, %s441_s28  }
   0x9   :  { %430 = dma.done.wait [#allocation3], 256  }
   0xa   :  { %431 = vsyncadd [#allocation3], 4294967040 }
   0xb   :  { %432 = dma.done.wait [#allocation6], 1024  }
   0xc   :  { %433 = vsyncadd [#allocation6], 4294966272  ;;  %v58_v0 = vld [vmem:[#allocation5 + $0x30] sm:$0xff]  ;;  %v56_v1 = vld [vmem:[#allocation5 + $0x20] sm:$0xff]  ;;  %vm60_vm0 = vcmask 261120   ;;  %v167_v48 = vlaneseq  ;;  %vm171_vm9 = vcmask 1041409  }
   0xd   :  { %79 = vmatpush.msra.mxu0 %v58_v0  ;;  %315 = vmatpush.msra.mxu2 %v58_v0  ;;  %v54_v2 = vld [vmem:[#allocation5 + $0x10] sm:$0xff]  ;;  %v59_v3 = vld [vmem:[#allocation5 + $0x38] sm:$0xff]  ;;  %v57_v4 = vld [vmem:[#allocation5 + $0x28] sm:$0xff]  ;;  %vm174_vm10 = vcmask 58368   ;;  %v442_v55 = vmov 0   ;;  %vm252_vm11 = vcmask 254976  }
   0xe   :  { %v52_v5 = vld [vmem:[#allocation5] sm:$0xff]  ;;  %102 = vmatpush.msra.mxu1 %v59_v3  ;;  %319 = vmatpush.msra.mxu3 %v59_v3  ;;  %v475_v6 = vld [vmem:[#allocation2] sm:$0xff]  ;;  %v477_v7 = vld [vmem:[#allocation2 + $0x8] sm:$0xff]  ;;  %v168_v49 = vand.u32 127, %v167_v48  ;;  %vm285_vm15 = vcmask 326656   ;;  %s297_s7 = sshll.u32 %s512_s4, 4  ;;  %s298_s7 = int_to_ptr.hbm [resolvable:$true] %s297_s7 }
   0xf   :  { %80 = vmatpush.msra.mxu0 %v56_v1  ;;  %316 = vmatpush.msra.mxu2 %v56_v1  ;;  %v55_v8 = vld [vmem:[#allocation5 + $0x18] sm:$0xff]  ;;  %v53_v9 = vld [vmem:[#allocation5 + $0x8] sm:$0xff]  ;;  %v334_v33 = vld [vmem:[%s510_s2] ss:$0 sm:$0xff] }
  0x10   :  { %103 = vmatpush.msra.mxu1 %v57_v4  ;;  %320 = vmatpush.msra.mxu3 %v57_v4 }
  0x11   :  { %81 = vmatpush.msra.mxu0 %v54_v2  ;;  %317 = vmatpush.msra.mxu2 %v54_v2 }
  0x12   :  { %104 = vmatpush.msra.mxu1 %v55_v8  ;;  %321 = vmatpush.msra.mxu3 %v55_v8 }
  0x13   :  { %82 = vmatpush.msra.mxu0 %v52_v5  ;;  %318 = vmatpush.msra.mxu2 %v52_v5 }
  0x14   :  { %308 = vmatmul.msk.f32.vlgmr.msra.gmra.mxu0 %vm60_vm0, %v475_v6  ;;  %309 = vmatmul.msk.f32.vlgmr.msra.gmra.mxu2 %vm60_vm0, %v477_v7 }
  0x15   :  { %105 = vmatpush.msra.mxu1 %v53_v9  ;;  %322 = vmatpush.msra.mxu3 %v53_v9 }
  0x16   :  { %310 = vmatmul.msk.f32.vlgmr.msra.gmra.mxu1 %vm60_vm0, %v475_v6  ;;  %311 = vmatmul.msk.f32.vlgmr.msra.gmra.mxu3 %vm60_vm0, %v477_v7 }
  0x17   :  { %332 = vset.pattern.permute.xlu2 %v442_v55  ;;  %331 = vset.pattern.permute.xlu1 %v442_v55 }
  0x18   :  { %333 = vset.pattern.permute.xlu0 %v442_v55 }
  0x91   :  { %v84_v10 = vpop.f32.mrf.mxu0 }
  0x92   :  { %v312_v11 = vmul.f32 -1.442695, %v84_v10 }
  0x93   :  { %v107_v18 = vpop.f32.mrf.mxu1 }
  0x94   :  { %336 = vpow2.f32 %v312_v11 }
  0x97   :  { %v87_v12 = vpop.f32.mrf.mxu2 }
  0x98   :  { %v313_v13 = vmul.f32 -1.442695, %v87_v12 }
  0x99   :  { %v110_v23 = vpop.f32.mrf.mxu3 }
  0x9a   :  { %v337_v14 = vpop.eup %336  ;;  %338 = vpow2.f32 %v313_v13 }
  0x9b   :  { %v119_v15 = vadd.f32 1.0, %v337_v14 }
  0x9d   :  { %340 = vrcp.f32 %v119_v15  ;;  %v132_v22 = vand.u32 2147483648, %v119_v15  ;;  %v130_v25 = vand.u32 2147483647, %v119_v15  ;;  %vm126_vm2 = vweird.f32 %v119_v15 }
  0x9f   :  { %v133_v30 = vor.u32 1.1754944e-38, %v132_v22  ;;  %vm131_vm4 = vcmp.eq.f32.partialorder %v130_v25, 8.507059e+37 }
  0xa0   :  { %v339_v16 = vpop.eup %338 }
  0xa1   :  { %v120_v17 = vadd.f32 1.0, %v339_v16 }
  0xa3   :  { %v341_v19 = vpop.eup %340  ;;  %342 = vrcp.f32 %v120_v17  ;;  %v147_v35 = vand.u32 2147483648, %v120_v17  ;;  %v145_v38 = vand.u32 2147483647, %v120_v17  ;;  %vm141_vm6 = vweird.f32 %v120_v17 }
  0xa4   :  { %v122_v20 = vmul.f32 %v341_v19, %v119_v15  ;;  %344 = vtanh.f32 %v107_v18  ;;  %vm127_vm1 = vweird.f32 %v341_v19 }
  0xa5   :  { %346 = vtanh.f32 %v110_v23  ;;  %vm128_vm3 = vmor %vm126_vm2, %vm127_vm1  ;;  %v148_v42 = vor.u32 1.1754944e-38, %v147_v35  ;;  %vm146_vm8 = vcmp.eq.f32.partialorder %v145_v38, 8.507059e+37  ;;  %vm287_vm1 = vcmask 334848  }
  0xa6   :  { %v123_v21 = vsub.f32 1.0, %v122_v20 }
  0xa8   :  { %v124_v24 = vmul.f32 %v341_v19, %v123_v21 }
  0xa9   :  { %v343_v26 = vpop.eup %342 }
  0xaa   :  { %v137_v27 = vmul.f32 %v343_v26, %v120_v17  ;;  %v125_v28 = vadd.f32 %v341_v19, %v124_v24  ;;  %v345_v29 = vpop.eup %344  ;;  %vm142_vm5 = vweird.f32 %v343_v26 }
  0xab   :  { %v347_v41 = vpop.eup %346  ;;  %vm143_vm7 = vmor %vm141_vm6, %vm142_vm5 }
  0xac   :  { %v138_v31 = vsub.f32 1.0, %v137_v27  ;;  %v129_v32 = vsel %vm128_vm3, %v341_v19, %v125_v28  ;;  %v279_v28 = vadd.s32 4294967264, %v168_v49 }
  0xad   :  { %v134_v34 = vsel %vm131_vm4, %v133_v30, %v129_v32 }
  0xae   :  { %v153_v36 = vmul.f32 %v345_v29, %v134_v34  ;;  %v139_v37 = vmul.f32 %v343_v26, %v138_v31 }
  0xb0   :  { %v159_v39 = vmul.f32 %v334_v33, %v153_v36  ;;  %v140_v40 = vadd.f32 %v343_v26, %v139_v37 }
  0xb2   :  { %161 = vadd.xlane.f32.xlu0 %v159_v39  ;;  %v144_v43 = vsel %vm143_vm7, %v343_v26, %v140_v40 }
  0xb3   :  { %v149_v44 = vsel %vm146_vm8, %v148_v42, %v144_v43 }
  0xb4   :  { %v154_v45 = vmul.f32 %v347_v41, %v149_v44 }
  0xb6   :  { %v160_v46 = vmul.f32 %v334_v33, %v154_v45 }
  0xba   :  { %163 = vadd.xlane.f32.xlu0 %v160_v46 }
 0x125   :  { %v162_v47 = vpop.xlane.xlu0 %161 }
 0x126   :  { %v169_v51 = vperm.slane %v162_v47, %v168_v49 }
 0x12d   :  { %v164_v50 = vpop.xlane.xlu0 %163 }
 0x12e   :  { %v170_v52 = vperm.slane %v164_v50, %v168_v49 }
 0x130   :  { %v172_v53 = vsel %vm171_vm9, %v170_v52, %v169_v51 }
 0x131   :  { %v175_v54 = vsel %vm174_vm10, %v172_v53, -inf }
 0x132   :  { %176 = vmax.xlane.f32.xlu1 %v175_v54 }
 0x1a5   :  { %v177_v56 = vpop.xlane.xlu1 %176 }
 0x1a6   :  { %v179_v57 = vperm.slane %v177_v56, 0  ;;  %v180_v58 = vperm.slane %v177_v56, 1 }
 0x1a8   :  { %v183_v59 = vsub.f32 %v162_v47, %v179_v57  ;;  %v184_v60 = vsub.f32 %v164_v50, %v180_v58 }
 0x1aa   :  { %v185_v61 = vmul.f32 1.442695, %v183_v59  ;;  %v187_v62 = vmul.f32 1.442695, %v184_v60 }
 0x1ac   :  { %348 = vpow2.f32 %v185_v61 }
 0x1ad   :  { %350 = vpow2.f32 %v187_v62 }
 0x1b2   :  { %v349_v63 = vpop.eup %348 }
 0x1b3   :  { %v351_v0 = vpop.eup %350  ;;  %192 = vperm.xlu1 %331, %v349_v63  }
 0x1b4   :  { %195 = vperm.xlu2 %332, %v351_v0  }
 0x20e   :  { %v196_v1 = vpop.permute.xlu2 %195 }
 0x20f   :  { %v198_v3 = vperm.slane %v196_v1, %v168_v49 }
 0x225   :  { %v193_v2 = vpop.permute.xlu1 %192 }
 0x226   :  { %v197_v4 = vperm.slane %v193_v2, %v168_v49 }
 0x228   :  { %v199_v5 = vsel %vm171_vm9, %v198_v3, %v197_v4 }
 0x229   :  { %v201_v8 = vsel %vm174_vm10, %v199_v5, 0.0 }
 0x22a   :  { %202 = vadd.xlane.f32.xlu2 %v201_v8 }
 0x29d   :  { %v203_v9 = vpop.xlane.xlu2 %202 }
 0x29e   :  { %352 = vrcp.f32 %v203_v9 }
 0x2a4   :  { %v353_v10 = vpop.eup %352 }
 0x2a5   :  { %v205_v11 = vmul.f32 %v353_v10, %v203_v9 }
 0x2a7   :  { %v206_v12 = vsub.f32 2.0, %v205_v11 }
 0x2a9   :  { %v207_v13 = vmul.f32 %v353_v10, %v206_v12 }
 0x2ab   :  { %v209_v14 = vperm.slane %v207_v13, 0  ;;  %v210_v15 = vperm.slane %v207_v13, 1 }
 0x2ad   :  { %v214_v16 = vmul.f32 %v351_v0, %v210_v15  ;;  %v213_v17 = vmul.f32 %v349_v63, %v209_v14 }
 0x2af   :  { %222 = vperm.xlu0 %333, %v214_v16   ;;  %217 = vperm.xlu1 %331, %v213_v17  }
 0x321   :  { %v223_v18 = vpop.permute.xlu0 %222  ;;  %v218_v19 = vpop.permute.xlu1 %217 }
 0x322   :  { %v226_v20 = vmul.f32 %v223_v18, %v477_v7  ;;  %v225_v21 = vmul.f32 %v218_v19, %v475_v6  ;;  %v281_v34 = vperm.slane %v223_v18, %v279_v28  ;;  %v280_v36 = vperm.slane %v218_v19, %v279_v28  ;;  %v335_v6 = vld [vmem:[%s511_s3] ss:$0 sm:$0xff]  ;;  %s443_s3 = smov [#allocation7]  }
 0x323   :  { %s295_s30 = sshll.u32 %s443_s3, 4  ;;  %s296_s30 = int_to_ptr.vmem [resolvable:$true] %s295_s30 }
 0x324   :  { %v234_v22 = vsel %vm60_vm0, %v226_v20, 0.0  ;;  %v227_v23 = vsel %vm60_vm0, %v225_v21, 0.0  ;;  %v282_v38 = vsel %vm171_vm9, %v281_v34, %v280_v36 }
 0x325   :  { %v235_v24 = vrot.slane %v234_v22, 4  ;;  %v228_v25 = vrot.slane %v227_v23, 4 }
 0x327   :  { %v236_v26 = vadd.f32 %v235_v24, %v234_v22  ;;  %v229_v27 = vadd.f32 %v228_v25, %v227_v23 }
 0x329   :  { %v237_v29 = vrot.slane %v236_v26, 2  ;;  %v230_v30 = vrot.slane %v229_v27, 2 }
 0x32b   :  { %v238_v31 = vadd.f32 %v237_v29, %v236_v26  ;;  %v231_v32 = vadd.f32 %v230_v30, %v229_v27 }
 0x32d   :  { %v239_v33 = vrot.slane %v238_v31, 1  ;;  %v232_v35 = vrot.slane %v231_v32, 1 }
 0x32f   :  { %v240_v7 = vadd.f32 %v239_v33, %v238_v31  ;;  %v233_v37 = vadd.f32 %v232_v35, %v231_v32 }
 0x331   :  { %v246_v39 = vmul.f32 %v335_v6, %v240_v7  ;;  %v277_v40 = vsel %vm171_vm9, %v240_v7, %v233_v37  ;;  %v245_v42 = vmul.f32 %v335_v6, %v233_v37 }
 0x332   :  { %v284_v41 = vsel %vm60_vm0, %v277_v40, %v282_v38 }
 0x333   :  { %v249_v43 = vrot.slane %v246_v39, 7 }
 0x335   :  { %v250_v44 = vsel %vm171_vm9, %v249_v43, %v245_v42 }
 0x336   :  { %v253_v45 = vsel %vm252_vm11, %v250_v44, 0.0 }
 0x337   :  { %254 = vadd.xlane.f32.xlu1 %v253_v45 }
 0x3aa   :  { %v255_v46 = vpop.xlane.xlu1 %254 }
 0x3ab   :  { %v314_v47 = vmul.f32 -1.442695, %v255_v46 }
 0x3ad   :  { %354 = vpow2.f32 %v314_v47 }
 0x3b3   :  { %v355_v48 = vpop.eup %354 }
 0x3b4   :  { %v259_v49 = vadd.f32 1.0, %v355_v48 }
 0x3b6   :  { %356 = vrcp.f32 %v259_v49  ;;  %v271_v53 = vand.u32 2147483648, %v259_v49  ;;  %v269_v55 = vand.u32 2147483647, %v259_v49  ;;  %vm265_vm13 = vweird.f32 %v259_v49 }
 0x3b8   :  { %v272_v57 = vor.u32 1.1754944e-38, %v271_v53  ;;  %vm270_vm0 = vcmp.eq.f32.partialorder %v269_v55, 8.507059e+37 }
 0x3bc   :  { %v357_v50 = vpop.eup %356 }
 0x3bd   :  { %v261_v51 = vmul.f32 %v357_v50, %v259_v49  ;;  %vm266_vm12 = vweird.f32 %v357_v50 }
 0x3be   :  { %vm267_vm14 = vmor %vm265_vm13, %vm266_vm12 }
 0x3bf   :  { %v262_v52 = vsub.f32 1.0, %v261_v51 }
 0x3c1   :  { %v263_v54 = vmul.f32 %v357_v50, %v262_v52 }
 0x3c3   :  { %v264_v56 = vadd.f32 %v357_v50, %v263_v54 }
 0x3c5   :  { %v268_v58 = vsel %vm267_vm14, %v357_v50, %v264_v56 }
 0x3c6   :  { %v273_v59 = vsel %vm270_vm0, %v272_v57, %v268_v58 }
 0x3c7   :  { %v286_v60 = vsel %vm285_vm15, %v284_v41, %v273_v59 }
 0x3c8   :  { %v288_v61 = vsel %vm287_vm1, %v286_v60, 0.0 }
 0x3c9   :  { %289 = vst [vmem:[#allocation7] sm:$0x3] %v288_v61 }
 0x3ca   :  { %300 = dma.vmem_to_hbm [thread:$0]  %s296_s30, 32, %s298_s7, [#allocation4]  }
 0x3cb   :  { %434 = dma.done.wait [#allocation4], 32  }
 0x3cc   :  { %435 = vsyncadd [#allocation4], 4294967264 }
 0x3cd   :  { %305 = vsyncpa [#allocation3], 1 }
 0x3ce   :  { %306 = vsyncpa [#allocation6], 1 }
 0x3cf   :  { %307 = vsyncpa [#allocation4], 1 }

</bundles_post_ra>
